<compile_context>
chip_gen: v7x
topology: tpu7x:2x2x1
jax: 0.10.0
libtpu: 0.0.40
codegen_flags: <defaults>
</compile_context>

<pallas_src>
import functools

import jax
import jax.numpy as jnp
from jax import lax
from jax.experimental import pallas as pl
from jax.experimental.pallas import tpu as pltpu


def _bounded_positive_diag_kernel(z_ref, o_ref, *, inv_g: float):
    """One row slab: o[i*b:(i+1)*b, :] of (1/g) * eye(n) * exp(-Z**2)."""
    i = pl.program_id(0)
    b = z_ref.shape[0]            # rows in this slab
    rows, cols = o_ref.shape      # (b, n) full-width slab

    # --- compact the diagonal of the (b, b) block Z[i*b:, i*b:] into (b, 1) ---
    z = z_ref[...].astype(jnp.float32)
    r_loc = lax.broadcasted_iota(jnp.int32, (b, b), 0)
    c_loc = lax.broadcasted_iota(jnp.int32, (b, b), 1)
    diag = jnp.sum(jnp.where(r_loc == c_loc, z, 0.0), axis=1, keepdims=True)  # (b, 1)

    # exp / scale on ~b elements instead of b*b (keeps EUP off the critical path)
    vals = inv_g * jnp.exp(-(diag * diag))                                    # (b, 1)

    # --- scatter the diagonal band into the full-width slab (lane-dense store) ---
    col_g = lax.broadcasted_iota(jnp.int32, (rows, cols), 1)
    row_g = i * rows + lax.broadcasted_iota(jnp.int32, (rows, cols), 0)
    o_ref[...] = jnp.where(col_g == row_g, vals, 0.0).astype(o_ref.dtype)


def _pick_block_rows(n: int, itemsize: int, *, target_rows: int = 256,
                     slab_bytes_cap: int = 8 << 20) -> int:
    """Row-slab height: full n when small, else a multiple of 128 capped so one
    (b, n) slab stays <= ~8 MiB (double-buffering fits v7x's 64 MiB VMEM)."""
    if n <= target_rows:
        return n
    b = target_rows
    while b > 128 and b * n * itemsize > slab_bytes_cap:
        b -= 128
    return b


def bounded_positive_diag(Z: jax.Array, g: float, *, block_rows: int | None = None) -> jax.Array:
    """(1/g) * eye(n) * exp(-Z**2) for a square (n, n) matrix Z."""
    n = Z.shape[0]
    assert Z.ndim == 2 and Z.shape == (n, n), "Z must be square (n, n)"
    itemsize = jnp.dtype(Z.dtype).itemsize

    b = block_rows if block_rows is not None else _pick_block_rows(n, itemsize)
    b = min(b, n)
    # Input block (b, b) must have a lane dim that is either a multiple of 128
    # or the full array dim.
    assert b == n or b % 128 == 0, "block_rows must be a multiple of 128 (or == n)"
    n_blocks = pl.cdiv(n, b)

    # VMEM budget: double-buffered output slab + tiny input block, with margin.
    slab_bytes = b * n * itemsize
    vmem_bytes = 2 * (slab_bytes + b * b * itemsize) + (2 << 20)
    vmem_limit = int(min(max(vmem_bytes, 16 << 20), 48 << 20))

    cost = pl.CostEstimate(
        flops=3 * n * b,                     # compaction + square + scale work
        transcendentals=n,                   # one exp per diagonal element
        bytes_accessed=n * n * itemsize + n_blocks * b * b * itemsize,
    )

    kernel = functools.partial(_bounded_positive_diag_kernel, inv_g=float(1.0 / g))

    return pl.pallas_call(
        kernel,
        out_shape=jax.ShapeDtypeStruct((n, n), Z.dtype),
        grid=(n_blocks,),
        # Only the diagonal (i, i) block of Z is ever read: O(n*b) HBM reads.
        in_specs=[pl.BlockSpec((b, b), lambda i: (i, i))],
        # Full-width row slab: lane-dense, unmasked stores, few grid steps.
        out_specs=pl.BlockSpec((b, n), lambda i: (i, 0)),
        compiler_params=pltpu.CompilerParams(
            dimension_semantics=("parallel",),
            vmem_limit_bytes=vmem_limit,
        ),
        cost_estimate=cost,
    )(Z)


def _reference(Z: jax.Array, g: float) -> jax.Array:
    mask = (1.0 / g) * jnp.eye(Z.shape[0], dtype=jnp.float32)
    return (mask * jnp.exp(-(Z.astype(jnp.float32) ** 2))).astype(Z.dtype)


if __name__ == "__main__":
    key = jax.random.PRNGKey(0)

    # Module-sized case: n = 32 (single full-array slab, grid (1,)).
    n, g = 32, 2.0
    Z = jax.random.normal(key, (n, n), dtype=jnp.float32)
    out = jax.block_until_ready(bounded_positive_diag(Z, g))
    ref = _reference(Z, g)
    assert out.shape == (n, n) and out.dtype == jnp.float32
    assert jnp.allclose(out, ref, atol=1e-6, rtol=1e-6), "mismatch vs reference (n=32)"

    # Multi-slab case: exercises the 1-D row-slab grid, diagonal compaction,
    # and the broadcast-select band scatter.
    n2, g2 = 256, 3.0
    Z2 = jax.random.normal(jax.random.PRNGKey(0), (n2, n2), dtype=jnp.float32)
    out2 = jax.block_until_ready(bounded_positive_diag(Z2, g2, block_rows=128))
    ref2 = _reference(Z2, g2)
    assert jnp.allclose(out2, ref2, atol=1e-6, rtol=1e-6), "mismatch vs reference (n=256)"

    print("KERNEL_OK")
</pallas_src>

<mosaic_0001>
module attributes {stable_mosaic.version = 11 : i64} {
  func.func @_bounded_positive_diag_kernel(%arg0: i32, %arg1: memref<32x32xf32, #tpu.memory_space<vmem>>, %arg2: memref<32x32xf32, #tpu.memory_space<vmem>>) attributes {dimension_semantics = [#tpu.dimension_semantics<parallel>], iteration_bounds = array<i64: 1>, scalar_prefetch = 0 : i64, scratch_operands = 0 : i64, tpu.core_type = #tpu.core_type<tc>, window_params = [{transform_indices = @transform_0, window_bounds = array<i64: 32, 32>}, {transform_indices = @transform_1, window_bounds = array<i64: 32, 32>}]} {
    %c0 = arith.constant 0 : index
    %c0_0 = arith.constant 0 : index
    %0 = vector.load %arg1[%c0, %c0_0] : memref<32x32xf32, #tpu.memory_space<vmem>>, vector<32x32xf32>
    %1 = tpu.iota {dimensions = array<i32: 0>} : vector<32x32xi32>
    %2 = tpu.iota {dimensions = array<i32: 1>} : vector<32x32xi32>
    %3 = arith.cmpi eq, %1, %2 : vector<32x32xi32>
    %cst = arith.constant 0.000000e+00 : f32
    %4 = vector.broadcast %cst : f32 to vector<32x32xf32>
    %5 = arith.select %3, %0, %4 : vector<32x32xi1>, vector<32x32xf32>
    %cst_1 = arith.constant dense<0.000000e+00> : vector<32xf32>
    %6 = vector.multi_reduction <add>, %5, %cst_1 [1] : vector<32x32xf32> to vector<32xf32>
    %7 = vector.shape_cast %6 : vector<32xf32> to vector<32x1xf32>
    %8 = arith.mulf %7, %7 : vector<32x1xf32>
    %cst_2 = arith.constant 0.000000e+00 : f32
    %9 = vector.broadcast %cst_2 : f32 to vector<32x1xf32>
    %10 = arith.subf %9, %8 : vector<32x1xf32>
    %11 = math.exp %10 : vector<32x1xf32>
    %cst_3 = arith.constant 5.000000e-01 : f32
    %12 = vector.broadcast %cst_3 : f32 to vector<32x1xf32>
    %13 = arith.mulf %12, %11 : vector<32x1xf32>
    %14 = tpu.iota {dimensions = array<i32: 1>} : vector<32x32xi32>
    %c32_i32 = arith.constant 32 : i32
    %15 = arith.muli %arg0, %c32_i32 : i32
    %16 = tpu.iota {dimensions = array<i32: 0>} : vector<32x32xi32>
    %17 = vector.broadcast %15 : i32 to vector<32x32xi32>
    %18 = arith.addi %17, %16 : vector<32x32xi32>
    %19 = arith.cmpi eq, %14, %18 : vector<32x32xi32>
    %cst_4 = arith.constant 0.000000e+00 : f32
    %20 = vector.shape_cast %13 : vector<32x1xf32> to vector<32x1xf32>
    %21 = vector.broadcast %20 : vector<32x1xf32> to vector<32x32xf32>
    %22 = vector.broadcast %cst_4 : f32 to vector<32x32xf32>
    %23 = arith.select %19, %21, %22 : vector<32x32xi1>, vector<32x32xf32>
    %c0_5 = arith.constant 0 : index
    %c0_6 = arith.constant 0 : index
    %24 = vector.load %arg2[%c0_5, %c0_6] : memref<32x32xf32, #tpu.memory_space<vmem>>, vector<32x32xf32>
    tpu.vector_store %arg2[%c0_5, %c0_6], %23 {strides = array<i32>} : memref<32x32xf32, #tpu.memory_space<vmem>>, vector<32x32xf32>,
    return
  }
  func.func @transform_0(%arg0: i32) -> (i32, i32) {
    %c0_i32 = arith.constant 0 : i32
    return %arg0, %arg0 : i32, i32
  }
  func.func @transform_1(%arg0: i32) -> (i32, i32) {
    %c0_i32 = arith.constant 0 : i32
    %c0_i32_0 = arith.constant 0 : i32
    return %arg0, %c0_i32 : i32, i32
  }
}

</mosaic_0001>

<bundles_post_ra>
// kernel: tpu_custom_call.1
= control target key start
LH: loop header
LB: loop body
LE: loop exit
PB: predicated region body
PF: predicated region fallthrough
CT: control target
= control target key end

     0   :  { %6 = vsyncpa [#allocation3], 0  ;;  %s245_s0 = inlined_call_operand.hbm [shape: f32[32,32], index: 0, kind: input, shape index: {}]   ;;  %s246_s1 = inlined_call_operand.hbm [shape: f32[32,32], index: 1, kind: output, shape index: {}]  }
   0x1   :  { %7 = vsyncpa [#allocation4], 0  ;;  %s170_s6 = smov [#allocation2]   ;;  %s122_s10 = scalar_lea.hbm %s245_s0, 512 }
   0x2   :  { %s13_s7 = sshll.u32 %s170_s6, 4  ;;  %p123_p0 = scmp.ne.s32.totalorder %s245_s0, %s122_s10  ;;  %s14_s7 = int_to_ptr.vmem [resolvable:$true] %s13_s7 }
   0x3   :  { %p126_p1 = scmp.lt.u32.totalorder %s122_s10, %s245_s0 }
   0x5   :  { %p128_p2 = pnand %p126_p1, %p123_p0 }
   0x7   :  { %131 = shalt.err (!%p128_p2)
}
   0x8   :  { %s132_s15 = scalar_lea.vmem %s14_s7, 512  ;;  %p137_p4 = scmp.lt.s32.totalorder %s14_s7, %s14_s7 }
   0x9   :  { %p133_p3 = scmp.ne.s32.totalorder %s14_s7, %s132_s15  ;;  %p138_p5 = scmp.lt.s32.totalorder %s132_s15, %s132_s15 }
   0xb   :  { %p139_p6 = por %p138_p5, %p137_p4 }
   0xd   :  { %p140_p7 = pnand %p139_p6, %p133_p3 }
   0xf   :  { %143 = shalt.err (!%p140_p7)
}
  0x10   :  { %s171_s16 = smov 128   ;;  %s172_s17 = smov 8  }
  0x11   :  { %19 = dma.hbm_to_vmem [thread:$0]  %s245_s0, 512, %s14_s7, [#allocation3], %s171_s16, %s171_s16, %s172_s17  }
  0x12   :  { %166 = dma.done.wait [#allocation3], 512  }
  0x13   :  { %167 = vsyncadd [#allocation3], 4294966784  ;;  %v27_v0 = vlaneseq  ;;  %vm42_vm0 = vcmask 261120   ;;  %v25_v6 = vld [vmem:[#allocation2 + $0x10] sm:$0xff]  ;;  %v23_v7 = vld [vmem:[#allocation2] sm:$0xff]  ;;  %s173_s0 = smov [#allocation5]  }
  0x14   :  { %v26_v8 = vld [vmem:[#allocation2 + $0x18] sm:$0xff]  ;;  %v24_v12 = vld [vmem:[#allocation2 + $0x8] sm:$0xff]  ;;  %s98_s20 = sshll.u32 %s173_s0, 4  ;;  %s99_s20 = int_to_ptr.vmem [resolvable:$true] %s98_s20 }
  0x15   :  { %v28_v1 = vshrl.u32 %v27_v0, 7  ;;  %v199_v2 = vand.u32 127, %v27_v0  ;;  %s144_s21 = scalar_lea.vmem %s99_s20, 512  ;;  %p149_p9 = scmp.lt.s32.totalorder %s99_s20, %s99_s20 }
  0x16   :  { %p145_p8 = scmp.ne.s32.totalorder %s99_s20, %s144_s21  ;;  %p150_p10 = scmp.lt.s32.totalorder %s144_s21, %s144_s21 }
  0x17   :  { %v30_v3 = vadd.s32 16, %v28_v1  ;;  %v31_v4 = vadd.s32 24, %v28_v1  ;;  %v201_v5 = vadd.s32 8, %v28_v1  ;;  %vm34_vm1 = vcmp.eq.s32.totalorder %v28_v1, %v199_v2 }
  0x18   :  { %v38_v10 = vsel %vm34_vm1, %v23_v7, 0.0  ;;  %vm81_vm8 = vcmp.eq.s32.totalorder %v199_v2, %v28_v1  ;;  %p151_p11 = por %p150_p10, %p149_p9 }
  0x19   :  { %vm36_vm2 = vcmp.eq.s32.totalorder %v30_v3, %v199_v2  ;;  %vm83_vm3 = vcmp.eq.s32.totalorder %v199_v2, %v30_v3  ;;  %vm37_vm4 = vcmp.eq.s32.totalorder %v31_v4, %v199_v2  ;;  %vm84_vm5 = vcmp.eq.s32.totalorder %v199_v2, %v31_v4 }
  0x1a   :  { %vm35_vm6 = vcmp.eq.s32.totalorder %v201_v5, %v199_v2  ;;  %vm82_vm7 = vcmp.eq.s32.totalorder %v199_v2, %v201_v5  ;;  %v40_v9 = vsel %vm36_vm2, %v25_v6, 0.0  ;;  %v41_v11 = vsel %vm37_vm4, %v26_v8, 0.0  ;;  %p152_p12 = pnand %p151_p11, %p145_p8 }
  0x1b   :  { %v49_v13 = vsel %vm42_vm0, %v40_v9, 0.0  ;;  %v43_v14 = vsel %vm42_vm0, %v38_v10, 0.0  ;;  %v39_v15 = vsel %vm35_vm6, %v24_v12, 0.0  ;;  %v52_v16 = vsel %vm42_vm0, %v41_v11, 0.0 }
  0x1c   :  { %50 = vadd.xlane.f32.xlu1 %v49_v13  ;;  %44 = vadd.xlane.f32.xlu0 %v43_v14  ;;  %v46_v17 = vsel %vm42_vm0, %v39_v15, 0.0 }
  0x20   :  { %53 = vadd.xlane.f32.xlu1 %v52_v16  ;;  %47 = vadd.xlane.f32.xlu0 %v46_v17 }
  0xa9   :  { %v51_v18 = vpop.xlane.xlu1 %50  ;;  %v45_v19 = vpop.xlane.xlu0 %44 }
  0xaa   :  { %v57_v20 = vmul.f32 %v51_v18, %v51_v18  ;;  %v55_v21 = vmul.f32 %v45_v19, %v45_v19 }
  0xac   :  { %v61_v22 = vsub.f32 0.0, %v57_v20  ;;  %v59_v23 = vsub.f32 0.0, %v55_v21 }
  0xad   :  { %v54_v24 = vpop.xlane.xlu1 %53  ;;  %v48_v25 = vpop.xlane.xlu0 %47 }
  0xae   :  { %v67_v26 = vmul.f32 1.442695, %v61_v22  ;;  %v63_v27 = vmul.f32 1.442695, %v59_v23  ;;  %v58_v28 = vmul.f32 %v54_v24, %v54_v24  ;;  %v56_v29 = vmul.f32 %v48_v25, %v48_v25 }
  0xb0   :  { %114 = vpow2.f32 %v67_v26  ;;  %v62_v30 = vsub.f32 0.0, %v58_v28  ;;  %v60_v31 = vsub.f32 0.0, %v56_v29 }
  0xb1   :  { %116 = vpow2.f32 %v63_v27 }
  0xb2   :  { %v69_v32 = vmul.f32 1.442695, %v62_v30  ;;  %v65_v33 = vmul.f32 1.442695, %v60_v31 }
  0xb4   :  { %118 = vpow2.f32 %v69_v32 }
  0xb5   :  { %120 = vpow2.f32 %v65_v33 }
  0xba   :  { %v115_v34 = vpop.eup %114 }
  0xbb   :  { %v117_v35 = vpop.eup %116  ;;  %v73_v36 = vmul.f32 0.5, %v115_v34 }
  0xbc   :  { %v71_v37 = vmul.f32 0.5, %v117_v35 }
  0xbd   :  { %v87_v38 = vsel %vm83_vm3, %v73_v36, 0.0 }
  0xbe   :  { %v119_v39 = vpop.eup %118  ;;  %91 = vst.msk [vmem:[#allocation5 + $0x10] sm:$0xff] %vm42_vm0, %v87_v38  ;;  %v85_v40 = vsel %vm81_vm8, %v71_v37, 0.0 }
  0xbf   :  { %v121_v41 = vpop.eup %120  ;;  %89 = vst.msk [vmem:[#allocation5] sm:$0xff] %vm42_vm0, %v85_v40  ;;  %v74_v42 = vmul.f32 0.5, %v119_v39 }
  0xc0   :  { %v72_v43 = vmul.f32 0.5, %v121_v41 }
  0xc1   :  { %v88_v44 = vsel %vm84_vm5, %v74_v42, 0.0 }
  0xc2   :  { %92 = vst.msk [vmem:[#allocation5 + $0x18] sm:$0xff] %vm42_vm0, %v88_v44  ;;  %v86_v45 = vsel %vm82_vm7, %v72_v43, 0.0 }
  0xc3   :  { %90 = vst.msk [vmem:[#allocation5 + $0x8] sm:$0xff] %vm42_vm0, %v86_v45 }
  0xc4   :  { %155 = shalt.err (!%p152_p12)
}
  0xc5   :  { %s156_s24 = scalar_lea.hbm %s246_s1, 512 }
  0xc6   :  { %p157_p13 = scmp.ne.s32.totalorder %s246_s1, %s156_s24  ;;  %p160_p0 = scmp.lt.u32.totalorder %s156_s24, %s246_s1 }
  0xc8   :  { %p162_p1 = pnand %p160_p0, %p157_p13 }
  0xca   :  { %165 = shalt.err (!%p162_p1)
}
  0xcb   :  { %104 = dma.vmem_to_hbm [thread:$0]  %s99_s20, 512, %s246_s1, [#allocation4], %s171_s16, %s171_s16, %s172_s17  }
  0xcc   :  { %168 = dma.done.wait [#allocation4], 512  }
  0xcd   :  { %169 = vsyncadd [#allocation4], 4294966784 }
  0xce   :  { %108 = vsyncpa [#allocation3], 1 }
  0xcf   :  { %109 = vsyncpa [#allocation4], 1 }

</bundles_post_ra>
